<compile_context>
chip_gen: v7x
topology: tpu7x:2x2x1
jax: 0.10.0
libtpu: 0.0.40
codegen_flags: <defaults>
</compile_context>

<pallas_src>
import functools

import jax
import jax.numpy as jnp
from jax.experimental import pallas as pl
from jax.experimental.pallas import tpu as pltpu


def _attn_kernel(q_ref, k_ref, v_ref, o_ref, *, num_heads, head_size):
    """Refs are (Bblk, S, num_hidden) lane-dense tiles (hidden = H * Dh)."""
    H, Dh = num_heads, head_size

    q = q_ref[...]  # (Bblk, S, H*Dh) f32
    k = k_ref[...]
    v = v_ref[...]
    bblk, s_len, _ = q.shape

    # attention_scores[b,s,d,e] = sum_h q[b,s,h*Dh+d] * k[b,s,h*Dh+e]
    # (contraction over the num_heads axis, K = H = 4: unrolled as VPU
    #  broadcast multiply-adds rather than a <2%-utilized MXU matmul)
    scores = jnp.zeros((bblk, s_len, Dh, Dh), jnp.float32)
    for h in range(H):
        qh = q[:, :, h * Dh:(h + 1) * Dh]                  # (Bblk, S, Dh)
        kh = k[:, :, h * Dh:(h + 1) * Dh]                  # (Bblk, S, Dh)
        scores = scores + qh[:, :, :, None] * kh[:, :, None, :]

    # TODO(synk): the optional `mask` argument of the PyTorch forward is not
    # implemented (mask=None path only).

    # softmax(dim=-1), numerically stable; reciprocal of the denominator goes
    # to the otherwise-idle EUP slot.
    scores = scores - jnp.max(scores, axis=-1, keepdims=True)
    p = jnp.exp(scores)
    p = p * pl.reciprocal(jnp.sum(p, axis=-1, keepdims=True), approx=True)

    # outputs[b,s,h*Dh+d] = sum_e p[b,s,d,e] * v[b,s,h*Dh+e]
    # Written directly in the final (B, S, num_hidden) hidden layout, so no
    # transpose/reshape is needed outside the kernel.  Lane reductions (sum
    # over e) run on the XLU.
    for h in range(H):
        vh = v[:, :, h * Dh:(h + 1) * Dh]                  # (Bblk, S, Dh)
        out_h = jnp.sum(p * vh[:, :, None, :], axis=-1)    # (Bblk, S, Dh)
        o_ref[:, :, h * Dh:(h + 1) * Dh] = out_h.astype(o_ref.dtype)


def self_attention(q, k, v, num_heads=4):
    """q, k, v: (B, S, num_hidden) float32. Returns (B, S, num_hidden)."""
    B, S, num_hidden = q.shape
    assert num_hidden % num_heads == 0
    head_size = num_hidden // num_heads

    # Split the batch across (at most) two parallel grid steps so both
    # TensorCores on v7x get work; each block is a full lane-dense
    # (bblk, S, num_hidden) slab (last dim = full hidden width).
    n_blocks = 2 if (B >= 2 and B % 2 == 0) else 1
    bblk = B // n_blocks

    spec = pl.BlockSpec((bblk, S, num_hidden), lambda i: (i, 0, 0))
    kernel = functools.partial(
        _attn_kernel, num_heads=num_heads, head_size=head_size)

    return pl.pallas_call(
        kernel,
        out_shape=jax.ShapeDtypeStruct((B, S, num_hidden), q.dtype),
        grid=(n_blocks,),
        in_specs=[spec, spec, spec],
        out_specs=spec,
        compiler_params=pltpu.CompilerParams(
            dimension_semantics=("parallel",)),
    )(q, k, v)


def _reference(q, k, v, num_heads=4):
    """Pure-JAX replica of the PyTorch forward, for verification."""
    B, S, num_hidden = q.shape
    Dh = num_hidden // num_heads
    H = num_heads
    t4s = lambda x: jnp.swapaxes(x.reshape(B, S, H, Dh), -1, -2)
    qt, kt, vt = t4s(q), t4s(k), t4s(v)
    scores = jnp.matmul(qt, jnp.swapaxes(kt, -1, -2))
    scores = jax.nn.softmax(scores, axis=-1)
    out = jnp.matmul(scores, vt)
    return jnp.swapaxes(out, -1, -2).reshape(B, S, H * Dh)


if __name__ == "__main__":
    B, S, num_hidden, num_heads = 2, 8, 32, 4
    key = jax.random.PRNGKey(0)
    kq, kk, kv = jax.random.split(key, 3)
    q = jax.random.normal(kq, (B, S, num_hidden), dtype=jnp.float32)
    k = jax.random.normal(kk, (B, S, num_hidden), dtype=jnp.float32)
    v = jax.random.normal(kv, (B, S, num_hidden), dtype=jnp.float32)

    out = jax.block_until_ready(self_attention(q, k, v, num_heads=num_heads))
    ref = _reference(q, k, v, num_heads=num_heads)

    assert out.shape == (B, S, num_hidden)
    # Slightly loose tolerance: softmax denominator uses the approximate
    # (EUP) reciprocal.
    assert jnp.allclose(out, ref, atol=2e-3, rtol=2e-3), float(
        jnp.max(jnp.abs(out - ref)))
    print("KERNEL_OK")
</pallas_src>

<mosaic_0001>
module attributes {stable_mosaic.version = 11 : i64} {
  func.func @_attn_kernel(%arg0: i32, %arg1: memref<1x8x32xf32, #tpu.memory_space<vmem>>, %arg2: memref<1x8x32xf32, #tpu.memory_space<vmem>>, %arg3: memref<1x8x32xf32, #tpu.memory_space<vmem>>, %arg4: memref<1x8x32xf32, #tpu.memory_space<vmem>>) attributes {dimension_semantics = [#tpu.dimension_semantics<parallel>], iteration_bounds = array<i64: 2>, scalar_prefetch = 0 : i64, scratch_operands = 0 : i64, tpu.core_type = #tpu.core_type<tc>, window_params = [{transform_indices = @transform_0, window_bounds = array<i64: 1, 8, 32>}, {transform_indices = @transform_1, window_bounds = array<i64: 1, 8, 32>}, {transform_indices = @transform_2, window_bounds = array<i64: 1, 8, 32>}, {transform_indices = @transform_3, window_bounds = array<i64: 1, 8, 32>}]} {
    %c0 = arith.constant 0 : index
    %c0_0 = arith.constant 0 : index
    %c0_1 = arith.constant 0 : index
    %0 = vector.load %arg1[%c0, %c0_0, %c0_1] : memref<1x8x32xf32, #tpu.memory_space<vmem>>, vector<1x8x32xf32>
    %c0_2 = arith.constant 0 : index
    %c0_3 = arith.constant 0 : index
    %c0_4 = arith.constant 0 : index
    %1 = vector.load %arg2[%c0_2, %c0_3, %c0_4] : memref<1x8x32xf32, #tpu.memory_space<vmem>>, vector<1x8x32xf32>
    %c0_5 = arith.constant 0 : index
    %c0_6 = arith.constant 0 : index
    %c0_7 = arith.constant 0 : index
    %2 = vector.load %arg3[%c0_5, %c0_6, %c0_7] : memref<1x8x32xf32, #tpu.memory_space<vmem>>, vector<1x8x32xf32>
    %cst = arith.constant 0.000000e+00 : f32
    %3 = vector.broadcast %cst : f32 to vector<1x8x8x8xf32>
    %4 = vector.extract_strided_slice %0 {offsets = [0, 0, 0], sizes = [1, 8, 8], strides = [1, 1, 1]} : vector<1x8x32xf32> to vector<1x8x8xf32>
    %5 = vector.extract_strided_slice %1 {offsets = [0, 0, 0], sizes = [1, 8, 8], strides = [1, 1, 1]} : vector<1x8x32xf32> to vector<1x8x8xf32>
    %6 = vector.shape_cast %4 : vector<1x8x8xf32> to vector<1x8x8x1xf32>
    %7 = vector.shape_cast %5 : vector<1x8x8xf32> to vector<1x8x1x8xf32>
    %8 = vector.broadcast %6 : vector<1x8x8x1xf32> to vector<1x8x8x8xf32>
    %9 = vector.broadcast %7 : vector<1x8x1x8xf32> to vector<1x8x8x8xf32>
    %10 = arith.mulf %8, %9 : vector<1x8x8x8xf32>
    %11 = arith.addf %3, %10 : vector<1x8x8x8xf32>
    %12 = vector.extract_strided_slice %0 {offsets = [0, 0, 8], sizes = [1, 8, 8], strides = [1, 1, 1]} : vector<1x8x32xf32> to vector<1x8x8xf32>
    %13 = vector.extract_strided_slice %1 {offsets = [0, 0, 8], sizes = [1, 8, 8], strides = [1, 1, 1]} : vector<1x8x32xf32> to vector<1x8x8xf32>
    %14 = vector.shape_cast %12 : vector<1x8x8xf32> to vector<1x8x8x1xf32>
    %15 = vector.shape_cast %13 : vector<1x8x8xf32> to vector<1x8x1x8xf32>
    %16 = vector.broadcast %14 : vector<1x8x8x1xf32> to vector<1x8x8x8xf32>
    %17 = vector.broadcast %15 : vector<1x8x1x8xf32> to vector<1x8x8x8xf32>
    %18 = arith.mulf %16, %17 : vector<1x8x8x8xf32>
    %19 = arith.addf %11, %18 : vector<1x8x8x8xf32>
    %20 = vector.extract_strided_slice %0 {offsets = [0, 0, 16], sizes = [1, 8, 8], strides = [1, 1, 1]} : vector<1x8x32xf32> to vector<1x8x8xf32>
    %21 = vector.extract_strided_slice %1 {offsets = [0, 0, 16], sizes = [1, 8, 8], strides = [1, 1, 1]} : vector<1x8x32xf32> to vector<1x8x8xf32>
    %22 = vector.shape_cast %20 : vector<1x8x8xf32> to vector<1x8x8x1xf32>
    %23 = vector.shape_cast %21 : vector<1x8x8xf32> to vector<1x8x1x8xf32>
    %24 = vector.broadcast %22 : vector<1x8x8x1xf32> to vector<1x8x8x8xf32>
    %25 = vector.broadcast %23 : vector<1x8x1x8xf32> to vector<1x8x8x8xf32>
    %26 = arith.mulf %24, %25 : vector<1x8x8x8xf32>
    %27 = arith.addf %19, %26 : vector<1x8x8x8xf32>
    %28 = vector.extract_strided_slice %0 {offsets = [0, 0, 24], sizes = [1, 8, 8], strides = [1, 1, 1]} : vector<1x8x32xf32> to vector<1x8x8xf32>
    %29 = vector.extract_strided_slice %1 {offsets = [0, 0, 24], sizes = [1, 8, 8], strides = [1, 1, 1]} : vector<1x8x32xf32> to vector<1x8x8xf32>
    %30 = vector.shape_cast %28 : vector<1x8x8xf32> to vector<1x8x8x1xf32>
    %31 = vector.shape_cast %29 : vector<1x8x8xf32> to vector<1x8x1x8xf32>
    %32 = vector.broadcast %30 : vector<1x8x8x1xf32> to vector<1x8x8x8xf32>
    %33 = vector.broadcast %31 : vector<1x8x1x8xf32> to vector<1x8x8x8xf32>
    %34 = arith.mulf %32, %33 : vector<1x8x8x8xf32>
    %35 = arith.addf %27, %34 : vector<1x8x8x8xf32>
    %cst_8 = arith.constant dense<0xFF800000> : vector<1x8x8xf32>
    %36 = vector.multi_reduction <maximumf>, %35, %cst_8 [3] : vector<1x8x8x8xf32> to vector<1x8x8xf32>
    %37 = vector.shape_cast %36 : vector<1x8x8xf32> to vector<1x8x8x1xf32>
    %38 = vector.broadcast %37 : vector<1x8x8x1xf32> to vector<1x8x8x8xf32>
    %39 = arith.subf %35, %38 : vector<1x8x8x8xf32>
    %40 = math.exp %39 : vector<1x8x8x8xf32>
    %cst_9 = arith.constant dense<0.000000e+00> : vector<1x8x8xf32>
    %41 = vector.multi_reduction <add>, %40, %cst_9 [3] : vector<1x8x8x8xf32> to vector<1x8x8xf32>
    %42 = vector.shape_cast %41 : vector<1x8x8xf32> to vector<1x8x8x1xf32>
    %43 = tpu.reciprocal %42 {approx = true} : vector<1x8x8x1xf32> -> vector<1x8x8x1xf32>
    %44 = vector.broadcast %43 : vector<1x8x8x1xf32> to vector<1x8x8x8xf32>
    %45 = arith.mulf %40, %44 : vector<1x8x8x8xf32>
    %46 = vector.extract_strided_slice %2 {offsets = [0, 0, 0], sizes = [1, 8, 8], strides = [1, 1, 1]} : vector<1x8x32xf32> to vector<1x8x8xf32>
    %47 = vector.shape_cast %46 : vector<1x8x8xf32> to vector<1x8x1x8xf32>
    %48 = vector.broadcast %47 : vector<1x8x1x8xf32> to vector<1x8x8x8xf32>
    %49 = arith.mulf %45, %48 : vector<1x8x8x8xf32>
    %cst_10 = arith.constant dense<0.000000e+00> : vector<1x8x8xf32>
    %50 = vector.multi_reduction <add>, %49, %cst_10 [3] : vector<1x8x8x8xf32> to vector<1x8x8xf32>
    %c0_11 = arith.constant 0 : index
    %c0_12 = arith.constant 0 : index
    %c0_13 = arith.constant 0 : index
    %51 = vector.load %arg4[%c0_11, %c0_12, %c0_13] : memref<1x8x32xf32, #tpu.memory_space<vmem>>, vector<1x8x8xf32>
    tpu.vector_store %arg4[%c0_11, %c0_12, %c0_13], %50 {strides = array<i32>} : memref<1x8x32xf32, #tpu.memory_space<vmem>>, vector<1x8x8xf32>,
    %52 = vector.extract_strided_slice %2 {offsets = [0, 0, 8], sizes = [1, 8, 8], strides = [1, 1, 1]} : vector<1x8x32xf32> to vector<1x8x8xf32>
    %53 = vector.shape_cast %52 : vector<1x8x8xf32> to vector<1x8x1x8xf32>
    %54 = vector.broadcast %53 : vector<1x8x1x8xf32> to vector<1x8x8x8xf32>
    %55 = arith.mulf %45, %54 : vector<1x8x8x8xf32>
    %cst_14 = arith.constant dense<0.000000e+00> : vector<1x8x8xf32>
    %56 = vector.multi_reduction <add>, %55, %cst_14 [3] : vector<1x8x8x8xf32> to vector<1x8x8xf32>
    %c0_15 = arith.constant 0 : index
    %c0_16 = arith.constant 0 : index
    %c8 = arith.constant 8 : index
    %57 = vector.load %arg4[%c0_15, %c0_16, %c8] : memref<1x8x32xf32, #tpu.memory_space<vmem>>, vector<1x8x8xf32>
    tpu.vector_store %arg4[%c0_15, %c0_16, %c8], %56 {strides = array<i32>} : memref<1x8x32xf32, #tpu.memory_space<vmem>>, vector<1x8x8xf32>,
    %58 = vector.extract_strided_slice %2 {offsets = [0, 0, 16], sizes = [1, 8, 8], strides = [1, 1, 1]} : vector<1x8x32xf32> to vector<1x8x8xf32>
    %59 = vector.shape_cast %58 : vector<1x8x8xf32> to vector<1x8x1x8xf32>
    %60 = vector.broadcast %59 : vector<1x8x1x8xf32> to vector<1x8x8x8xf32>
    %61 = arith.mulf %45, %60 : vector<1x8x8x8xf32>
    %cst_17 = arith.constant dense<0.000000e+00> : vector<1x8x8xf32>
    %62 = vector.multi_reduction <add>, %61, %cst_17 [3] : vector<1x8x8x8xf32> to vector<1x8x8xf32>
    %c0_18 = arith.constant 0 : index
    %c0_19 = arith.constant 0 : index
    %c16 = arith.constant 16 : index
    %63 = vector.load %arg4[%c0_18, %c0_19, %c16] : memref<1x8x32xf32, #tpu.memory_space<vmem>>, vector<1x8x8xf32>
    tpu.vector_store %arg4[%c0_18, %c0_19, %c16], %62 {strides = array<i32>} : memref<1x8x32xf32, #tpu.memory_space<vmem>>, vector<1x8x8xf32>,
    %64 = vector.extract_strided_slice %2 {offsets = [0, 0, 24], sizes = [1, 8, 8], strides = [1, 1, 1]} : vector<1x8x32xf32> to vector<1x8x8xf32>
    %65 = vector.shape_cast %64 : vector<1x8x8xf32> to vector<1x8x1x8xf32>
    %66 = vector.broadcast %65 : vector<1x8x1x8xf32> to vector<1x8x8x8xf32>
    %67 = arith.mulf %45, %66 : vector<1x8x8x8xf32>
    %cst_20 = arith.constant dense<0.000000e+00> : vector<1x8x8xf32>
    %68 = vector.multi_reduction <add>, %67, %cst_20 [3] : vector<1x8x8x8xf32> to vector<1x8x8xf32>
    %c0_21 = arith.constant 0 : index
    %c0_22 = arith.constant 0 : index
    %c24 = arith.constant 24 : index
    %69 = vector.load %arg4[%c0_21, %c0_22, %c24] : memref<1x8x32xf32, #tpu.memory_space<vmem>>, vector<1x8x8xf32>
    tpu.vector_store %arg4[%c0_21, %c0_22, %c24], %68 {strides = array<i32>} : memref<1x8x32xf32, #tpu.memory_space<vmem>>, vector<1x8x8xf32>,
    return
  }
  func.func @transform_0(%arg0: i32) -> (i32, i32, i32) {
    %c0_i32 = arith.constant 0 : i32
    %c0_i32_0 = arith.constant 0 : i32
    %c0_i32_1 = arith.constant 0 : i32
    return %arg0, %c0_i32, %c0_i32_0 : i32, i32, i32
  }
  func.func @transform_1(%arg0: i32) -> (i32, i32, i32) {
    %c0_i32 = arith.constant 0 : i32
    %c0_i32_0 = arith.constant 0 : i32
    %c0_i32_1 = arith.constant 0 : i32
    return %arg0, %c0_i32, %c0_i32_0 : i32, i32, i32
  }
  func.func @transform_2(%arg0: i32) -> (i32, i32, i32) {
    %c0_i32 = arith.constant 0 : i32
    %c0_i32_0 = arith.constant 0 : i32
    %c0_i32_1 = arith.constant 0 : i32
    return %arg0, %c0_i32, %c0_i32_0 : i32, i32, i32
  }
  func.func @transform_3(%arg0: i32) -> (i32, i32, i32) {
    %c0_i32 = arith.constant 0 : i32
    %c0_i32_0 = arith.constant 0 : i32
    %c0_i32_1 = arith.constant 0 : i32
    return %arg0, %c0_i32, %c0_i32_0 : i32, i32, i32
  }
}

</mosaic_0001>

<bundles_post_ra>
// kernel: tpu_custom_call.1
= control target key start
LH: loop header
LB: loop body
LE: loop exit
PB: predicated region body
PF: predicated region fallthrough
CT: control target
= control target key end

     0   :  { %s2340_s0 = inlined_call_operand.hbm [shape: f32[2,8,32], index: 0, kind: input, shape index: {}]   ;;  %s2341_s1 = inlined_call_operand.hbm [shape: f32[2,8,32], index: 1, kind: input, shape index: {}]   ;;  %s2342_s2 = inlined_call_operand.hbm [shape: f32[2,8,32], index: 2, kind: input, shape index: {}]   ;;  %s2343_s3 = inlined_call_operand.hbm [shape: f32[2,8,32], index: 3, kind: output, shape index: {}]  }
   0x1   :  { %2348 = sst [smem:[#allocation12_spill]] %s2341_s1 }
   0x2   :  { %8 = vsyncpa [#allocation3], 0 }
   0x3   :  { %10 = vsyncpa [#allocation3 + $0x1], 0 }
   0x4   :  { %11 = vsyncpa [#allocation6], 0 }
   0x5   :  { %13 = vsyncpa [#allocation6 + $0x1], 0 }
   0x6   :  { %14 = vsyncpa [#allocation4], 0 }
   0x7   :  { %16 = vsyncpa [#allocation4 + $0x1], 0  ;;  %s1681_s12 = smov 0   ;;  %s1683_s13 = smov 0  }
   0x8   :  { %s1685_s14 = smov 0   ;;  %s1687_s15 = smov 0  }
   0x9 LB: > { %s1702_s16 = sadd.s32 4294967295, %s1651_s15   ;;  %s1379_s17 = sadd.s32 4294967294, %s1651_s15   ;;  %s1651_s15 = sphi %s1687_s15, %s2367_s15   ;;  %s1647_s14 = sphi %s1685_s14, %s2366_s14   ;;  %s1643_s13 = sphi %s1683_s13, %s2365_s13   ;;  %s1639_s12 = sphi %s1681_s12, %s2364_s12  }
   0xa   : > { %s1706_s18 = sadd.s32 1, %s1651_s15   ;;  %s29_s19 = sadd.s32 1, %s1647_s14 }
   0xb   : > { %s26_s20 = ssub.s32 %s1651_s15, %s1706_s18  ;;  %p36_p0 = scmp.ne.s32.totalorder %s1647_s14, %s1643_s13 }
   0xc   : > { %p27_p1 = scmp.eq.s32.totalorder %s26_s20, 0  ;;  %p37_p2 = scmp.eq.s32.totalorder %s1651_s15, 0 }
   0xd   : > { %p42_p3 = scmp.ne.s32.totalorder %s1643_s13, %s1639_s12  ;;  %p43_p4 = scmp.eq.s32.totalorder %s1702_s16, 0 }
   0xe   : > { %s1718_s21 = scalar_select %p27_p1, %s1647_s14, %s29_s19  }
   0xf   : > { %p38_p5 = por %p37_p2, %p36_p0  ;;  %p1720_p6 = por %p43_p4, %p42_p3 }
  0x10   : > { %p118_p7 = scmp.eq.s32.totalorder %s1702_s16, 1  ;;  %p124_p8 = scmp.eq.s32.totalorder %s1379_s17, 1 }
  0x11   : > { %s2349_s22 = scalar_select %p1720_p6, 1, 0 }
  0x12   : > { %p1419_p10 = scmp.lt.s32.totalorder %s1651_s15, 2  ;;  %p1727_p11 = por %p118_p7, %p36_p0 }
  0x13   : > { %p1731_p12 = por %p124_p8, %p42_p3  ;;  %s144_s25 = sand.u32 1, %s1647_s14  }
  0x14   : > { %s2350_s23 = scalar_select %p1727_p11, 1, 0 }
  0x15   : > { %s2351_s24 = scalar_select %p1731_p12, 1, 0 }
  0x16   : > { %s1737_s26 = sshll.u32 %s1651_s15, 7  ;;  %s1741_s27 = sshll.u32 %s144_s25, 3 }
  0x17   : > { %p1743_p13 = pnand %p1419_p10, %p38_p5  ;;  %s162_s29 = sand.u32 1, %s1651_s15  }
  0x18   : > { %s2353_s1 = sld [smem:[#allocation12_spill]]  ;;  %s166_s6 = scalar_lea.vmem [#allocation5], %s1741_s27 }
  0x19   : > { %s2352_s28 = scalar_select %p1743_p13, 1, 0 }
  0x1a   : > { %s173_s7 = sshll.u32 %s166_s6, 4  ;;  %s1758_s8 = scalar_lea.sflag [#allocation6], %s162_s29  ;;  %s1755_s7 = int_to_ptr.vmem [resolvable:$true] %s173_s7 }
  0x1b   : > { %p1764_p2 = pneg %p1743_p13 }
  0x1e   : > { %s1752_s5 = scalar_lea.hbm %s2353_s1, %s1737_s26  ;;  %s1496_s19 = scalar_lea.hbm %s2353_s1, 256 }
  0x1f   : > { %s1491_s9 = scalar_lea.hbm %s1752_s5, 128  ;;  %p1497_p5 = scmp.lt.u32.totalorder %s1752_s5, %s2353_s1 }
  0x20   : > { %p1492_p1 = scmp.ne.s32.totalorder %s1752_s5, %s1491_s9  ;;  %p1498_p7 = scmp.lt.u32.totalorder %s1496_s19, %s1491_s9 }
  0x21   : > { %p1500_p10 = scmp.lt.u32.totalorder %s1491_s9, %s1752_s5 }
  0x22   : > { %p1494_p3 = pnand %p1764_p2, %p1492_p1  ;;  %p1499_p8 = por %p1498_p7, %p1497_p5 }
  0x24   : > { %p1495_p4 = pneg %p1494_p3  ;;  %p1501_p9 = por %p1500_p10, %p1499_p8 }
  0x26   : > { %p1502_p0 = pnand %p1501_p9, %p1495_p4 }
  0x28   : > { %1505 = shalt.err (!%p1502_p0)
}
  0x29   : > { %s1506_s29 = scalar_lea.vmem %s1755_s7, 128  ;;  %s1653_s4 = smov [#allocation5]  }
  0x2a   : > { %p1507_p1 = scmp.ne.s32.totalorder %s1755_s7, %s1506_s29  ;;  %s1511_s6 = sshll.u32 %s1653_s4, 4  ;;  %s1512_s6 = int_to_ptr.vmem [resolvable:$false] %s1511_s6 }
  0x2b   : > { %s1513_s11 = scalar_lea.vmem %s1512_s6, 256  ;;  %p1514_p11 = scmp.lt.s32.totalorder %s1755_s7, %s1512_s6 }
  0x2c   : > { %p1509_p3 = pnand %p1507_p1, %p1764_p2  ;;  %p1515_p6 = scmp.lt.s32.totalorder %s1513_s11, %s1506_s29 }
  0x2e   : > { %p1510_p12 = pneg %p1509_p3  ;;  %p1516_p5 = por %p1515_p6, %p1514_p11 }
  0x30   : > { %p1517_p7 = pnand %p1516_p5, %p1510_p12 }
  0x32   : > { %1520 = shalt.err (!%p1517_p7)
}
  0x33   : > { %1411 = dma.hbm_to_vmem [thread:$0]  (!%p1743_p13), %s1752_s5, 128, %s1755_s7, %s1758_s8  }
  0x34   : > { %p196_p9 = scmp.lt.s32.totalorder %s1651_s15, 3  ;;  %s1793_s19 = scalar_lea.hbm %s2340_s0, %s1737_s26 }
  0x35   : > { %p2355_p6 = scmp.ge.s32.totalorder %s1651_s15, 1  ;;  %s148_s30 = scalar_lea.vmem [#allocation2], %s1741_s27 }
  0x36   : > { %s155_s29 = sshll.u32 %s148_s30, 4  ;;  %s145_s5 = scalar_lea.sflag [#allocation3], %s144_s25  ;;  %s156_s29 = int_to_ptr.vmem [resolvable:$true] %s155_s29 }
  0x37   : > { %p1797_p11 = pnand %p2355_p6, %p196_p9  ;;  %s1521_s7 = scalar_lea.hbm %s1793_s19, 128 }
  0x38   : > { %p1522_p12 = scmp.ne.s32.totalorder %s1793_s19, %s1521_s7  ;;  %s1526_s11 = scalar_lea.hbm %s2340_s0, 256 }
  0x39   : > { %s2356_s20 = scalar_select %p1797_p11, 1, 0 }
  0x3a   : > { %p1524_p0 = pnand %p1522_p12, %p1764_p2  ;;  %p1527_p8 = scmp.lt.u32.totalorder %s1793_s19, %s2340_s0 }
  0x3b   : > { %p1528_p10 = scmp.lt.u32.totalorder %s1526_s11, %s1521_s7  ;;  %p1530_p3 = scmp.lt.u32.totalorder %s1521_s7, %s1793_s19 }
  0x3c   : > { %p1525_p4 = pneg %p1524_p0 }
  0x3d   : > { %p1529_p1 = por %p1528_p10, %p1527_p8 }
  0x3f   : > { %p1531_p5 = por %p1530_p3, %p1529_p1 }
  0x41   : > { %p1532_p7 = pnand %p1531_p5, %p1525_p4 }
  0x43   : > { %1535 = shalt.err (!%p1532_p7)
}
  0x44   : > { %s1536_s25 = scalar_lea.vmem %s156_s29, 128  ;;  %s1654_s30 = smov [#allocation2]  }
  0x45   : > { %p1537_p9 = scmp.ne.s32.totalorder %s156_s29, %s1536_s25  ;;  %s1541_s1 = sshll.u32 %s1654_s30, 4  ;;  %s1542_s1 = int_to_ptr.vmem [resolvable:$false] %s1541_s1 }
  0x46   : > { %s1543_s4 = scalar_lea.vmem %s1542_s1, 256  ;;  %p1544_p0 = scmp.lt.s32.totalorder %s156_s29, %s1542_s1 }
  0x47   : > { %p1539_p6 = pnand %p1537_p9, %p1764_p2  ;;  %p1545_p11 = scmp.lt.s32.totalorder %s1543_s4, %s1536_s25 }
  0x49   : > { %p1540_p12 = pneg %p1539_p6  ;;  %p1546_p13 = por %p1545_p11, %p1544_p0 }
  0x4b   : > { %p1547_p8 = pnand %p1546_p13, %p1540_p12 }
  0x4d   : > { %1550 = shalt.err (!%p1547_p8)
}
  0x4e   : > { %p2357_p10 = scmp.ne.s32.totalorder %s2352_s28, 0  ;;  %s1825_s11 = scalar_lea.hbm %s2342_s2, %s1737_s26 }
  0x4f   : > { %s184_s1 = scalar_lea.vmem [#allocation7], %s1741_s27  ;;  %s1551_s17 = scalar_lea.hbm %s1825_s11, 128 }
  0x50   : > { %1408 = dma.hbm_to_vmem [thread:$0]  (!%p2357_p10), %s1793_s19, 128, %s156_s29, %s145_s5  }
  0x51   : > { %s191_s9 = sshll.u32 %s184_s1, 4  ;;  %p1552_p13 = scmp.ne.s32.totalorder %s1825_s11, %s1551_s17  ;;  %s192_s9 = int_to_ptr.vmem [resolvable:$true] %s191_s9 }
  0x52   : > { %s1556_s19 = scalar_lea.hbm %s2342_s2, 256  ;;  %p1557_p1 = scmp.lt.u32.totalorder %s1825_s11, %s2342_s2 }
  0x53   : > { %p1554_p11 = pnand %p1552_p13, %p1764_p2  ;;  %p1558_p3 = scmp.lt.u32.totalorder %s1556_s19, %s1551_s17 }
  0x54   : > { %p1560_p7 = scmp.lt.u32.totalorder %s1551_s17, %s1825_s11 }
  0x55   : > { %p1555_p4 = pneg %p1554_p11  ;;  %p1559_p5 = por %p1558_p3, %p1557_p1 }
  0x57   : > { %p1561_p9 = por %p1560_p7, %p1559_p5 }
  0x59   : > { %p1562_p6 = pnand %p1561_p9, %p1555_p4 }
  0x5b   : > { %1565 = shalt.err (!%p1562_p6)
}
  0x5c   : > { %s1566_s26 = scalar_lea.vmem %s192_s9, 128  ;;  %s1655_s27 = smov [#allocation7]  }
  0x5d   : > { %p1567_p12 = scmp.ne.s32.totalorder %s192_s9, %s1566_s26  ;;  %s1571_s4 = sshll.u32 %s1655_s27, 4  ;;  %s1572_s4 = int_to_ptr.vmem [resolvable:$false] %s1571_s4 }
  0x5e   : > { %s1573_s7 = scalar_lea.vmem %s1572_s4, 256  ;;  %p1574_p13 = scmp.lt.s32.totalorder %s192_s9, %s1572_s4 }
  0x5f   : > { %p1569_p0 = pnand %p1567_p12, %p1764_p2  ;;  %p1575_p11 = scmp.lt.s32.totalorder %s1573_s7, %s1566_s26 }
  0x61   : > { %p1570_p8 = pneg %p1569_p0  ;;  %p1576_p10 = por %p1575_p11, %p1574_p13 }
  0x63   : > { %p1577_p1 = pnand %p1576_p10, %p1570_p8 }
  0x65   : > { %1580 = shalt.err (!%p1577_p1)
}
  0x66   : > { %p2358_p3 = scmp.ne.s32.totalorder %s2352_s28, 0  ;;  %p2359_p4 = scmp.ne.s32.totalorder %s2356_s20, 0 }
  0x67   : > { %s1849_s10 = sand.u32 (!%p2359_p4), 1, %s1643_s13   ;;  %p2360_p2 = scmp.ne.s32.totalorder (!%p2359_p4), %s2349_s22, 0 }
  0x68   : > { %1414 = dma.hbm_to_vmem [thread:$0]  (!%p2358_p3), %s1825_s11, 128, %s192_s9, %s1758_s8  }
  0x69   : > { %200 = sbr.rel (%p2359_p4) target bundleno = 987 (0x3db), region = 32  ;;  %s1852_s6 = sshll.u32 (!%p2359_p4), %s1849_s10, 3 }
  0x6a   : > { %s203_s1 = scalar_lea.sflag (!%p2359_p4), [#allocation3], %s1849_s10  ;;  %s206_s17 = scalar_lea.vmem (!%p2359_p4), [#allocation2], %s1852_s6 }
  0x70   : > { %1626 = dma.done.wait (%p2360_p2), %s203_s1, 128  }
  0x71   : > { %1628 = vsyncadd (%p2360_p2), %s203_s1, 4294967168  ;;  %s211_s28 = sand.u32 1, %s1702_s16   ;;  %s215_s20 = scalar_lea.vmem [#allocation5], %s1852_s6 }
  0x72   : > { %s212_s8 = scalar_lea.sflag [#allocation6], %s211_s28 }
  0x73   : > { %1630 = dma.done.wait (%p2360_p2), %s212_s8, 256  }
  0x74   : > { %1632 = vsyncadd (%p2360_p2), %s212_s8, 4294967040  ;;  %v260_v0 = vlaneseq  ;;  %v257_v6 = vld [vmem:[%s206_s17] sm:$0xff]  ;;  %v1656_v19 = vmov 1966171168   ;;  %s224_s22 = scalar_lea.vmem [#allocation7], %s1852_s6  ;;  %s1657_s11 = smov 120  }
  0x75   : > { %v319_v20 = vunpack.c.l.s4 %v1656_v19  ;;  %v259_v22 = vld [vmem:[%s224_s22] sm:$0xff]  ;;  %v258_v34 = vld [vmem:[%s215_s20] sm:$0xff]  ;;  %s1658_s9 = smov 112   ;;  %s1659_s25 = smov 104   ;;  %vm662_vm0 = vcmask 64512   ;;  %vm915_vm1 = vcmask 1041409  }
  0x76   : > { %v1867_v1 = vshrl.u32 %v260_v0, 7  ;;  %v752_v27 = vcombine.high %v259_v22, %v259_v22  ;;  %v317_v40 = vcombine.high %v258_v34, %v258_v34  ;;  %vm917_vm2 = vcmask 1042434   ;;  %s2260_s30 = scalar_lea.vmem [#allocation8], %s1852_s6  ;;  %s1394_s19 = sshll.u32 %s1702_s16, 7 }
  0x77   : > { %v320_v21 = vunpack.c.0.s8 %v319_v20  ;;  %vm919_vm3 = vcmask 1043459   ;;  %vm921_vm4 = vcmask 1044484   ;;  %vm923_vm5 = vcmask 1045509   ;;  %s1266_s29 = sshll.u32 %s2260_s30, 4  ;;  %s2294_s27 = scalar_lea.hbm %s2343_s3, %s1394_s19  ;;  %s2296_s29 = int_to_ptr.vmem [resolvable:$true] %s1266_s29 }
  0x78   : > { %v276_v2 = vsub.s32 2, %v1867_v1  ;;  %v1871_v3 = vsub.s32 0, %v1867_v1  ;;  %v283_v4 = vsub.s32 3, %v1867_v1  ;;  %v269_v5 = vsub.s32 1, %v1867_v1  ;;  %s1253_s16 = scalar_lea.sflag [#allocation4], %s1849_s10  ;;  %s1581_s4 = scalar_lea.vmem %s2296_s29, 128 }
  0x79   : > { %v290_v11 = vsub.s32 4, %v1867_v1  ;;  %v297_v13 = vsub.s32 5, %v1867_v1  ;;  %v304_v15 = vsub.s32 6, %v1867_v1  ;;  %v311_v17 = vsub.s32 7, %v1867_v1  ;;  %p1582_p10 = scmp.ne.s32.totalorder %s2296_s29, %s1581_s4  ;;  %p2361_p5 = scmp.ne.s32.totalorder %s2350_s23, 0 }
  0x7a   : > { %v277_v7 = vrot.slane %v257_v6, %v276_v2  ;;  %v263_v8 = vrot.slane %v257_v6, %v1871_v3  ;;  %v284_v9 = vrot.slane %v257_v6, %v283_v4  ;;  %v270_v10 = vrot.slane %v257_v6, %v269_v5  ;;  %s1660_s7 = smov [#allocation8]  }
  0x7b   : > { %v291_v12 = vrot.slane %v257_v6, %v290_v11  ;;  %v298_v14 = vrot.slane %v257_v6, %v297_v13  ;;  %v305_v16 = vrot.slane %v257_v6, %v304_v15  ;;  %v312_v18 = vrot.slane %v257_v6, %v311_v17  ;;  %p1583_p7 = pnand %p1582_p10, %p2361_p5  ;;  %s1585_s6 = sshll.u32 %s1660_s7, 4  ;;  %s1586_s6 = int_to_ptr.vmem [resolvable:$false] %s1585_s6 }
  0x7c   : > { %432 = vbcast.lane.b32.xlu1 %v277_v7, 264  ;;  %424 = vbcast.lane.b32.xlu0 %v263_v8, 264  ;;  %v323_v23 = vsub.s32 %v320_v21, %v1867_v1  ;;  %vm925_vm6 = vcmask 1046534   ;;  %vm927_vm7 = vcmask 1047559   ;;  %vm1036_vm8 = vcmask 130112   ;;  %s1587_s1 = scalar_lea.vmem %s1586_s6, 256  ;;  %p1588_p6 = scmp.lt.s32.totalorder %s2296_s29, %s1586_s6 }
  0x7d   : > { %vm1143_vm9 = vcmask 195712   ;;  %vm1250_vm10 = vcmask 261312   ;;  %p1584_p9 = pneg %p1583_p7  ;;  %p1589_p12 = scmp.lt.s32.totalorder %s1587_s1, %s1581_s4 }
  0x7e   : > { %v759_v24 = vrot.slane %v259_v22, %v323_v23  ;;  %v766_v28 = vrot.slane %v752_v27, %v323_v23  ;;  %v324_v35 = vrot.slane %v258_v34, %v323_v23  ;;  %v331_v46 = vrot.slane %v317_v40, %v323_v23 }
  0x7f   : > { %p1590_p0 = por %p1589_p12, %p1588_p6 }
  0x80   : > { %436 = vbcast.lane.b32.xlu1 %v284_v9, 264  ;;  %428 = vbcast.lane.b32.xlu0 %v270_v10, 264  ;;  %v767_v25 = vcombine.high %v759_v24, %v759_v24  ;;  %v1884_v29 = vrot.slane %v766_v28, %v323_v23  ;;  %v768_v30 = vcombine.high %v766_v28, %v766_v28 }
  0x81   : > { %v1888_v32 = vrot.slane %v759_v24, %v323_v23  ;;  %v340_v36 = vrot.slane %v324_v35, %v323_v23  ;;  %v332_v37 = vcombine.high %v324_v35, %v324_v35  ;;  %v333_v52 = vcombine.high %v331_v46, %v331_v46  ;;  %p1591_p8 = pnand %p1590_p0, %p1584_p9 }
  0x82   : > { %v1882_v26 = vrot.slane %v767_v25, %v323_v23  ;;  %v1886_v31 = vrot.slane %v768_v30, %v323_v23  ;;  %v347_v60 = vrot.slane %v331_v46, %v323_v23 }
  0x83   : > { %v1892_v33 = vrot.slane %v1888_v32, %v1871_v3  ;;  %v1899_v38 = vrot.slane %v340_v36, %v1871_v3  ;;  %v354_v39 = vrot.slane %v332_v37, %v323_v23  ;;  %v362_v41 = vcombine.high %v340_v36, %v340_v36 }
  0x84   : > { %508 = vbcast.lane.b32.xlu1 %v270_v10, 272  ;;  %504 = vbcast.lane.b32.xlu0 %v263_v8, 272  ;;  %v361_v58 = vrot.slane %v333_v52, %v323_v23  ;;  %v1925_v5 = vrot.slane %v347_v60, %v1871_v3 }
  0x85   : > { %v1903_v45 = vrot.slane %v354_v39, %v1871_v3  ;;  %v1906_v47 = vrot.slane %v362_v41, %v1871_v3  ;;  %v364_v48 = vcombine.high %v354_v39, %v354_v39 }
  0x86   : > { %v1921_v2 = vrot.slane %v361_v58, %v1871_v3  ;;  %v365_v20 = vcombine.high %v361_v58, %v361_v58  ;;  %v799_v58 = vcombine.high %v1882_v26, %v1882_v26 }
  0x87   : > { %v1912_v54 = vrot.slane %v364_v48, %v1871_v3 }
  0x88   : > { %512 = vbcast.lane.b32.xlu1 %v277_v7, 272  ;;  %440 = vbcast.lane.b32.xlu0 %v291_v12, 264  ;;  %v397_v25 = vrot.slane %v365_v20, %v1871_v3 }
  0x8c   : > { %444 = vbcast.lane.b32.xlu0 %v298_v14, 264  ;;  %516 = vbcast.lane.b32.xlu1 %v284_v9, 272 }
  0x90   : > { %584 = vbcast.lane.b32.xlu0 %v263_v8, 280  ;;  %588 = vbcast.lane.b32.xlu1 %v270_v10, 280 }
  0x94   : > { %448 = vbcast.lane.b32.xlu0 %v305_v16, 264  ;;  %520 = vbcast.lane.b32.xlu1 %v291_v12, 272 }
  0x98   : > { %592 = vbcast.lane.b32.xlu0 %v277_v7, 280  ;;  %452 = vbcast.lane.b32.xlu1 %v312_v18, 264 }
  0x9c   : > { %524 = vbcast.lane.b32.xlu0 %v298_v14, 272  ;;  %596 = vbcast.lane.b32.xlu1 %v284_v9, 280 }
  0xa0   : > { %528 = vbcast.lane.b32.xlu0 %v305_v16, 272  ;;  %600 = vbcast.lane.b32.xlu1 %v291_v12, 280 }
  0xa4   : > { %532 = vbcast.lane.b32.xlu0 %v312_v18, 272  ;;  %604 = vbcast.lane.b32.xlu1 %v298_v14, 280 }
  0xa8   : > { %608 = vbcast.lane.b32.xlu0 %v305_v16, 280  ;;  %612 = vbcast.lane.b32.xlu1 %v312_v18, 280 }
  0xac   : > { %265 = vbcast.lane.b32.xlu0 %v263_v8, 256  ;;  %272 = vbcast.lane.b32.xlu1 %v270_v10, 256 }
  0xb0   : > { %279 = vbcast.lane.b32.xlu0 %v277_v7, 256  ;;  %286 = vbcast.lane.b32.xlu1 %v284_v9, 256  ;;  %v363_v9 = vcombine.high %v347_v60, %v347_v60 }
  0xb4   : > { %293 = vbcast.lane.b32.xlu0 %v291_v12, 256  ;;  %314 = vbcast.lane.b32.xlu1 %v312_v18, 256 }
  0xb8   : > { %300 = vbcast.lane.b32.xlu0 %v298_v14, 256  ;;  %931 = vrot.lane.b32.xlu1 %v1892_v33, %s1657_s11  ;;  %v1935_v14 = vrot.slane %v363_v9, %v1871_v3 }
  0xbc   : > { %307 = vbcast.lane.b32.xlu0 %v305_v16, 256 }
  0xee   : > { %v433_v42 = vpop.permute.xlu1 %432  ;;  %v425_v43 = vpop.permute.xlu0 %424 }
  0xef   : > { %v454_v44 = vmul.f32 %v425_v43, %v1899_v38  ;;  %v456_v53 = vmul.f32 %v433_v42, %v1906_v47 }
  0xf1   : > { %470 = vrot.lane.b32.xlu0 %v454_v44, %s1657_s11 }
  0xf2   : > { %v437_v49 = vpop.permute.xlu1 %436  ;;  %v429_v50 = vpop.permute.xlu0 %428 }
  0xf3   : > { %v455_v51 = vmul.f32 %v429_v50, %v1903_v45  ;;  %v457_v59 = vmul.f32 %v437_v49, %v1912_v54  ;;  %v1965_v50 = vrot.slane %v1882_v26, %v1871_v3  ;;  %v798_v26 = vcombine.high %v1884_v29, %v1884_v29 }
  0xf5   : > { %472 = vrot.lane.b32.xlu1 %v455_v51, %s1657_s11 }
  0xf6   : > { %v509_v55 = vpop.permute.xlu1 %508  ;;  %v505_v56 = vpop.permute.xlu0 %504 }
  0xf7   : > { %v534_v57 = vmul.f32 %v505_v56, %v1899_v38  ;;  %v535_v4 = vmul.f32 %v509_v55, %v1903_v45  ;;  %v1974_v55 = vrot.slane %v1884_v29, %v1871_v3 }
  0xf9   : > { %474 = vrot.lane.b32.xlu1 %v456_v53, %s1657_s11  ;;  %550 = vrot.lane.b32.xlu0 %v534_v57, %s1658_s9  ;;  %v797_v53 = vcombine.high %v1888_v32, %v1888_v32  ;;  %v1991_v32 = vrot.slane %v799_v58, %v1871_v3 }
  0xfa   : > { %v513_v61 = vpop.permute.xlu1 %512  ;;  %v441_v62 = vpop.permute.xlu0 %440 }
  0xfb   : > { %v536_v63 = vmul.f32 %v513_v61, %v1906_v47  ;;  %v458_v10 = vmul.f32 %v441_v62, %v1925_v5  ;;  %v1980_v57 = vrot.slane %v797_v53, %v1871_v3  ;;  %v1999_v61 = vrot.slane %v1886_v31, %v1871_v3 }
  0xfc   : > { %v2024_v62 = vrot.slane %v798_v26, %v1871_v3 }
  0xfd   : > { %476 = vrot.lane.b32.xlu1 %v457_v59, %s1657_s11  ;;  %554 = vrot.lane.b32.xlu0 %v536_v63, %s1658_s9 }
  0xfe   : > { %v445_v6 = vpop.permute.xlu0 %444  ;;  %v517_v7 = vpop.permute.xlu1 %516 }
  0xff   : > { %v459_v8 = vmul.f32 %v445_v6, %v1921_v2  ;;  %v537_v15 = vmul.f32 %v517_v7, %v1912_v54 }
 0x101   : > { %552 = vrot.lane.b32.xlu1 %v535_v4, %s1658_s9  ;;  %480 = vrot.lane.b32.xlu0 %v459_v8, %s1657_s11 }
 0x102   : > { %v585_v11 = vpop.permute.xlu0 %584  ;;  %v589_v12 = vpop.permute.xlu1 %588 }
 0x103   : > { %v614_v13 = vmul.f32 %v585_v11, %v1899_v38  ;;  %v615_v19 = vmul.f32 %v589_v12, %v1903_v45 }
 0x105   : > { %478 = vrot.lane.b32.xlu1 %v458_v10, %s1657_s11  ;;  %630 = vrot.lane.b32.xlu0 %v614_v13, %s1659_s25 }
 0x106   : > { %v449_v16 = vpop.permute.xlu0 %448  ;;  %v521_v17 = vpop.permute.xlu1 %520 }
 0x107   : > { %v460_v18 = vmul.f32 %v449_v16, %v1935_v14  ;;  %v538_v24 = vmul.f32 %v521_v17, %v1925_v5 }
 0x109   : > { %556 = vrot.lane.b32.xlu1 %v537_v15, %s1658_s9  ;;  %482 = vrot.lane.b32.xlu0 %v460_v18, %s1657_s11 }
 0x10a   : > { %v593_v21 = vpop.permute.xlu0 %592  ;;  %v453_v22 = vpop.permute.xlu1 %452 }
 0x10b   : > { %v616_v23 = vmul.f32 %v593_v21, %v1906_v47  ;;  %v461_v34 = vmul.f32 %v453_v22, %v397_v25 }
 0x10d   : > { %632 = vrot.lane.b32.xlu1 %v615_v19, %s1659_s25  ;;  %634 = vrot.lane.b32.xlu0 %v616_v23, %s1659_s25 }
 0x10e   : > { %v525_v27 = vpop.permute.xlu0 %524  ;;  %v597_v28 = vpop.permute.xlu1 %596 }
 0x10f   : > { %v539_v30 = vmul.f32 %v525_v27, %v1921_v2  ;;  %v617_v39 = vmul.f32 %v597_v28, %v1912_v54 }
 0x111   : > { %558 = vrot.lane.b32.xlu1 %v538_v24, %s1658_s9  ;;  %560 = vrot.lane.b32.xlu0 %v539_v30, %s1658_s9 }
 0x112   : > { %v529_v35 = vpop.permute.xlu0 %528  ;;  %v601_v36 = vpop.permute.xlu1 %600 }
 0x113   : > { %v540_v37 = vmul.f32 %v529_v35, %v1935_v14  ;;  %v618_v43 = vmul.f32 %v601_v36, %v1925_v5 }
 0x115   : > { %484 = vrot.lane.b32.xlu1 %v461_v34, %s1657_s11  ;;  %562 = vrot.lane.b32.xlu0 %v540_v37, %s1658_s9 }
 0x116   : > { %v533_v40 = vpop.permute.xlu0 %532  ;;  %v605_v41 = vpop.permute.xlu1 %604 }
 0x117   : > { %v541_v42 = vmul.f32 %v533_v40, %v397_v25  ;;  %v619_v49 = vmul.f32 %v605_v41, %v1921_v2 }
 0x119   : > { %636 = vrot.lane.b32.xlu1 %v617_v39, %s1659_s25  ;;  %564 = vrot.lane.b32.xlu0 %v541_v42, %s1658_s9 }
 0x11a   : > { %v609_v44 = vpop.permute.xlu0 %608  ;;  %v613_v46 = vpop.permute.xlu1 %612 }
 0x11b   : > { %v620_v48 = vmul.f32 %v609_v44, %v1935_v14  ;;  %v621_v52 = vmul.f32 %v613_v46, %v397_v25 }
 0x11d   : > { %638 = vrot.lane.b32.xlu1 %v618_v43, %s1659_s25  ;;  %642 = vrot.lane.b32.xlu0 %v620_v48, %s1659_s25 }
 0x11e   : > { %v273_v51 = vpop.permute.xlu1 %272  ;;  %v266_v63 = vpop.permute.xlu0 %265 }
 0x11f   : > { %v406_v16 = vmul.f32 %v1899_v38, %v266_v63 }
 0x121   : > { %640 = vrot.lane.b32.xlu1 %v619_v49, %s1659_s25  ;;  %933 = vrot.lane.b32.xlu0 %v1965_v50, %s1657_s11 }
 0x122   : > { %v1976_v56 = vpop.permute.xlu1 %286  ;;  %v280_v4 = vpop.permute.xlu0 %279 }
 0x123   : > { %v408_v24 = vmul.f32 %v1906_v47, %v280_v4  ;;  %v409_v44 = vmul.f32 %v1912_v54, %v1976_v56 }
 0x125   : > { %644 = vrot.lane.b32.xlu1 %v621_v52, %s1659_s25  ;;  %939 = vrot.lane.b32.xlu0 %v1974_v55, %s1657_s11 }
 0x126   : > { %v315_v59 = vpop.permute.xlu1 %314  ;;  %v294_v6 = vpop.permute.xlu0 %293 }
 0x127   : > { %v1986_v60 = vmul.f32 %v397_v25, %v315_v59  ;;  %v407_v25 = vmul.f32 %v1903_v45, %v273_v51  ;;  %v410_v51 = vmul.f32 %v1925_v5, %v294_v6 }
 0x129   : > { %935 = vrot.lane.b32.xlu1 %v1980_v57, %s1657_s11  ;;  %1038 = vrot.lane.b32.xlu0 %v1892_v33, %s1658_s9 }
 0x12a   : > { %v301_v7 = vpop.permute.xlu0 %300  ;;  %v2028_v9 = vpop.permute.xlu1 %931 }
 0x12b   : > { %v411_v4 = vmul.f32 %v1921_v2, %v301_v7 }
 0x12d   : > { %937 = vrot.lane.b32.xlu1 %v1991_v32, %s1657_s11  ;;  %1042 = vrot.lane.b32.xlu0 %v1980_v57, %s1658_s9 }
 0x12e   : > { %v308_v8 = vpop.permute.xlu0 %307 }
 0x12f   : > { %v412_v59 = vmul.f32 %v1935_v14, %v308_v8 }
 0x131   : > { %941 = vrot.lane.b32.xlu1 %v1999_v61, %s1657_s11  ;;  %1147 = vrot.lane.b32.xlu0 %v1965_v50, %s1659_s25 }
 0x135   : > { %1040 = vrot.lane.b32.xlu1 %v1965_v50, %s1658_s9  ;;  %1149 = vrot.lane.b32.xlu0 %v1980_v57, %s1659_s25 }
 0x139   : > { %1145 = vrot.lane.b32.xlu1 %v1892_v33, %s1659_s25  ;;  %1151 = vrot.lane.b32.xlu0 %v1991_v32, %s1659_s25 }
 0x13d   : > { %1044 = vrot.lane.b32.xlu1 %v1991_v32, %s1658_s9  ;;  %1048 = vrot.lane.b32.xlu0 %v1999_v61, %s1658_s9 }
 0x141   : > { %1046 = vrot.lane.b32.xlu1 %v1974_v55, %s1658_s9 }
 0x145   : > { %943 = vrot.lane.b32.xlu1 %v2024_v62, %s1657_s11 }
 0x163   : > { %v471_v10 = vpop.permute.xlu0 %470 }
 0x164   : > { %v494_v19 = vadd.f32 %v471_v10, %v406_v16 }
 0x167   : > { %v473_v11 = vpop.permute.xlu1 %472 }
 0x168   : > { %v495_v38 = vadd.f32 %v473_v11, %v407_v25 }
 0x16b   : > { %v475_v12 = vpop.permute.xlu1 %474  ;;  %v551_v29 = vpop.permute.xlu0 %550 }
 0x16c   : > { %v574_v20 = vadd.f32 %v551_v29, %v494_v19  ;;  %v496_v34 = vadd.f32 %v475_v12, %v408_v24 }
 0x16f   : > { %v477_v13 = vpop.permute.xlu1 %476  ;;  %v555_v15 = vpop.permute.xlu0 %554 }
 0x170   : > { %v576_v35 = vadd.f32 %v555_v15, %v496_v34  ;;  %v497_v49 = vadd.f32 %v477_v13, %v409_v44 }
 0x173   : > { %v553_v17 = vpop.permute.xlu1 %552  ;;  %v481_v18 = vpop.permute.xlu0 %480 }
 0x174   : > { %v575_v36 = vadd.f32 %v553_v17, %v495_v38  ;;  %v499_v29 = vadd.f32 %v481_v18, %v411_v4  ;;  %v800_v17 = vcombine.high %v1886_v31, %v1886_v31 }
 0x176   : > { %v2071_v18 = vrot.slane %v800_v17, %v1871_v3 }
 0x177   : > { %v479_v21 = vpop.permute.xlu1 %478  ;;  %v631_v22 = vpop.permute.xlu0 %630 }
 0x178   : > { %v2031_v23 = vadd.f32 %v631_v22, %v574_v20  ;;  %v498_v26 = vadd.f32 %v479_v21, %v410_v51 }
 0x17a   : > { %v663_v27 = vsel %vm662_vm0, %v2031_v23, -inf }
 0x17b   : > { %v557_v28 = vpop.permute.xlu1 %556  ;;  %664 = vmax.xlane.f32.xlu0 %v663_v27  ;;  %v483_v30 = vpop.permute.xlu0 %482 }
 0x17c   : > { %v577_v52 = vadd.f32 %v557_v28, %v497_v49  ;;  %v500_v10 = vadd.f32 %v483_v30, %v412_v59 }
 0x17f   : > { %v633_v37 = vpop.permute.xlu1 %632  ;;  %v635_v39 = vpop.permute.xlu0 %634 }
 0x180   : > { %v2037_v40 = vadd.f32 %v633_v37, %v575_v36  ;;  %v2039_v41 = vadd.f32 %v635_v39, %v576_v35 }
 0x182   : > { %v666_v47 = vsel %vm662_vm0, %v2037_v40, -inf  ;;  %v669_v45 = vsel %vm662_vm0, %v2039_v41, -inf }
 0x183   : > { %667 = vmax.xlane.f32.xlu1 %v666_v47  ;;  %v559_v42 = vpop.permute.xlu1 %558  ;;  %670 = vmax.xlane.f32.xlu0 %v669_v45  ;;  %v561_v43 = vpop.permute.xlu0 %560 }
 0x184   : > { %v578_v11 = vadd.f32 %v559_v42, %v498_v26  ;;  %v579_v13 = vadd.f32 %v561_v43, %v499_v29 }
 0x187   : > { %v485_v46 = vpop.permute.xlu1 %484  ;;  %v563_v48 = vpop.permute.xlu0 %562 }
 0x188   : > { %v580_v5 = vadd.f32 %v563_v48, %v500_v10  ;;  %v501_v19 = vadd.f32 %v485_v46, %v1986_v60 }
 0x18b   : > { %v637_v53 = vpop.permute.xlu1 %636  ;;  %v565_v58 = vpop.permute.xlu0 %564 }
 0x18c   : > { %v2049_v63 = vadd.f32 %v637_v53, %v577_v52  ;;  %v581_v21 = vadd.f32 %v565_v58, %v501_v19 }
 0x18e   : > { %v672_v54 = vsel %vm662_vm0, %v2049_v63, -inf }
 0x18f   : > { %v639_v56 = vpop.permute.xlu1 %638  ;;  %673 = vmax.xlane.f32.xlu0 %v672_v54  ;;  %v643_v12 = vpop.permute.xlu0 %642 }
 0x190   : > { %v2054_v6 = vadd.f32 %v639_v56, %v578_v11  ;;  %v2056_v15 = vadd.f32 %v643_v12, %v580_v5 }
 0x192   : > { %v675_v14 = vsel %vm662_vm0, %v2054_v6, -inf  ;;  %v681_v16 = vsel %vm662_vm0, %v2056_v15, -inf }
 0x193   : > { %v641_v8 = vpop.permute.xlu1 %640  ;;  %676 = vmax.xlane.f32.xlu1 %v675_v14  ;;  %v2084_v3 = vpop.permute.xlu0 %933 }
 0x194   : > { %v2060_v2 = vadd.f32 %v641_v8, %v579_v13 }
 0x196   : > { %v678_v7 = vsel %vm662_vm0, %v2060_v2, -inf }
 0x197   : > { %679 = vmax.xlane.f32.xlu0 %v678_v7  ;;  %682 = vmax.xlane.f32.xlu1 %v681_v16  ;;  %v645_v20 = vpop.permute.xlu1 %644  ;;  %v2086_v24 = vpop.permute.xlu0 %939 }
 0x198   : > { %v2080_v31 = vadd.f32 %v645_v20, %v581_v21 }
 0x19a   : > { %v684_v22 = vsel %vm662_vm0, %v2080_v31, -inf }
 0x19b   : > { %v2088_v25 = vpop.permute.xlu1 %935  ;;  %v2092_v27 = vpop.permute.xlu0 %1038 }
 0x19f   : > { %v2094_v60 = vpop.permute.xlu1 %937  ;;  %v2096_v28 = vpop.permute.xlu0 %1042 }
 0x1a3   : > { %v2098_v30 = vpop.permute.xlu1 %941  ;;  %v2100_v38 = vpop.permute.xlu0 %1147 }
 0x1a7   : > { %v2102_v34 = vpop.permute.xlu1 %1040  ;;  %v2104_v35 = vpop.permute.xlu0 %1149 }
 0x1a8   : > { %1153 = vrot.lane.b32.xlu1 %v1974_v55, %s1659_s25 }
 0x1ab   : > { %v2106_v36 = vpop.permute.xlu1 %1145  ;;  %v2108_v37 = vpop.permute.xlu0 %1151 }
 0x1ac   : > { %1050 = vrot.lane.b32.xlu1 %v2024_v62, %s1658_s9 }
 0x1ad   : > { %945 = vrot.lane.b32.xlu0 %v2071_v18, %s1657_s11 }
 0x1af   : > { %v2110_v39 = vpop.permute.xlu1 %1044  ;;  %v2112_v47 = vpop.permute.xlu0 %1048 }
 0x1b0   : > { %1052 = vrot.lane.b32.xlu1 %v2071_v18, %s1658_s9 }
 0x1b3   : > { %v2114_v45 = vpop.permute.xlu1 %1046 }
 0x1b7   : > { %v2117_v44 = vpop.permute.xlu1 %943 }
 0x1cc   : > { %685 = vmax.xlane.f32.xlu0 %v684_v22 }
 0x1e2   : > { %1155 = vrot.lane.b32.xlu0 %v1999_v61, %s1659_s25 }
 0x208   : > { %v665_v42 = vpop.xlane.xlu0 %664 }
 0x209   : > { %v687_v43 = vsub.f32 %v2031_v23, %v665_v42 }
 0x20b   : > { %v695_v46 = vmul.f32 1.442695, %v687_v43 }
 0x20d   : > { %1459 = vpow2.f32 %v695_v46 }
 0x210   : > { %v668_v48 = vpop.xlane.xlu1 %667  ;;  %v671_v49 = vpop.xlane.xlu0 %670 }
 0x211   : > { %v688_v51 = vsub.f32 %v2037_v40, %v668_v48  ;;  %v689_v52 = vsub.f32 %v2039_v41, %v671_v49 }
 0x213   : > { %v697_v53 = vmul.f32 1.442695, %v688_v51  ;;  %v699_v58 = vmul.f32 1.442695, %v689_v52 }
 0x215   : > { %1461 = vpow2.f32 %v697_v53 }
 0x216   : > { %1463 = vpow2.f32 %v699_v58 }
 0x217   : > { %v1460_v59 = vpop.eup %1459 }
 0x218   : > { %v711_v26 = vsel %vm662_vm0, %v1460_v59, 0.0 }
 0x219   : > { %712 = vadd.xlane.f32.xlu1 %v711_v26 }
 0x21c   : > { %v674_v4 = vpop.xlane.xlu0 %673 }
 0x21d   : > { %v690_v23 = vsub.f32 %v2049_v63, %v674_v4 }
 0x21f   : > { %v1462_v10 = vpop.eup %1461  ;;  %v701_v11 = vmul.f32 1.442695, %v690_v23 }
 0x220   : > { %v1464_v54 = vpop.eup %1463  ;;  %v677_v56 = vpop.xlane.xlu1 %676  ;;  %v714_v12 = vsel %vm662_vm0, %v1462_v10, 0.0 }
 0x221   : > { %1465 = vpow2.f32 %v701_v11  ;;  %v691_v40 = vsub.f32 %v2054_v6, %v677_v56  ;;  %715 = vadd.xlane.f32.xlu0 %v714_v12  ;;  %v717_v41 = vsel %vm662_vm0, %v1464_v54, 0.0 }
 0x222   : > { %718 = vadd.xlane.f32.xlu1 %v717_v41 }
 0x223   : > { %v703_v29 = vmul.f32 1.442695, %v691_v40 }
 0x224   : > { %v683_v5 = vpop.xlane.xlu1 %682  ;;  %v680_v13 = vpop.xlane.xlu0 %679 }
 0x225   : > { %1467 = vpow2.f32 %v703_v29  ;;  %v693_v14 = vsub.f32 %v2056_v15, %v683_v5  ;;  %v692_v63 = vsub.f32 %v2060_v2, %v680_v13 }
 0x227   : > { %v707_v8 = vmul.f32 1.442695, %v693_v14  ;;  %v705_v7 = vmul.f32 1.442695, %v692_v63 }
 0x228   : > { %v2134_v2 = vpop.permute.xlu0 %945  ;;  %v2143_v51 = vpop.permute.xlu1 %1153 }
 0x229   : > { %1469 = vpow2.f32 %v707_v8 }
 0x22a   : > { %1471 = vpow2.f32 %v705_v7 }
 0x22b   : > { %v1466_v16 = vpop.eup %1465 }
 0x22c   : > { %v720_v17 = vsel %vm662_vm0, %v1466_v16, 0.0  ;;  %v2145_v52 = vpop.permute.xlu1 %1050 }
 0x22d   : > { %721 = vadd.xlane.f32.xlu0 %v720_v17 }
 0x22f   : > { %v1468_v6 = vpop.eup %1467 }
 0x230   : > { %v723_v19 = vsel %vm662_vm0, %v1468_v6, 0.0  ;;  %v2147_v53 = vpop.permute.xlu1 %1052 }
 0x231   : > { %724 = vadd.xlane.f32.xlu1 %v723_v19 }
 0x233   : > { %v1470_v20 = vpop.eup %1469 }
 0x234   : > { %v1472_v21 = vpop.eup %1471  ;;  %v729_v22 = vsel %vm662_vm0, %v1470_v20, 0.0 }
 0x235   : > { %730 = vadd.xlane.f32.xlu1 %v729_v22  ;;  %v726_v15 = vsel %vm662_vm0, %v1472_v21, 0.0 }
 0x236   : > { %727 = vadd.xlane.f32.xlu0 %v726_v15 }
 0x246   : > { %1159 = vrot.lane.b32.xlu1 %v2071_v18, %s1659_s25 }
 0x259   : > { %v686_v42 = vpop.xlane.xlu0 %685 }
 0x25a   : > { %v694_v43 = vsub.f32 %v2080_v31, %v686_v42 }
 0x25c   : > { %v709_v46 = vmul.f32 1.442695, %v694_v43 }
 0x25d   : > { %v2149_v31 = vpop.permute.xlu0 %1155 }
 0x25e   : > { %1473 = vpow2.f32 %v709_v46 }
 0x268   : > { %v2137_v48 = vpop.eup %1473 }
 0x269   : > { %v732_v49 = vsel %vm662_vm0, %v2137_v48, 0.0 }
 0x26a   : > { %733 = vadd.xlane.f32.xlu0 %v732_v49 }
 0x280   : > { %1157 = vrot.lane.b32.xlu0 %v2024_v62, %s1659_s25 }
 0x2a6   : > { %v713_v58 = vpop.xlane.xlu1 %712 }
 0x2a7   : > { %1475 = vrcp.f32 %v713_v58 }
 0x2ae   : > { %v716_v26 = vpop.xlane.xlu0 %715 }
 0x2af   : > { %v719_v4 = vpop.xlane.xlu1 %718  ;;  %1477 = vrcp.f32 %v716_v26 }
 0x2b0   : > { %1479 = vrcp.f32 %v719_v4 }
 0x2b1   : > { %v1476_v23 = vpop.eup %1475 }
 0x2b2   : > { %v2151_v11 = vmul.f32 %v1476_v23, %v1460_v59 }
 0x2b4   : > { %v841_v56 = vmul.f32 %v1892_v33, %v2151_v11 }
 0x2b6   : > { %v849_v12 = vsel %vm662_vm0, %v841_v56, 0.0 }
 0x2b7   : > { %850 = vadd.xlane.f32.xlu1 %v849_v12 }
 0x2b9   : > { %v1478_v40 = vpop.eup %1477 }
 0x2ba   : > { %v1480_v41 = vpop.eup %1479  ;;  %v722_v29 = vpop.xlane.xlu0 %721  ;;  %v2156_v5 = vmul.f32 %v1478_v40, %v1462_v10 }
 0x2bb   : > { %v2158_v13 = vmul.f32 %v1480_v41, %v1464_v54  ;;  %1481 = vrcp.f32 %v722_v29 }
 0x2bc   : > { %v842_v14 = vmul.f32 %v1965_v50, %v2156_v5  ;;  %v956_v26 = vmul.f32 %v2084_v3, %v2156_v5  ;;  %v1170_v56 = vmul.f32 %v2100_v38, %v2156_v5 }
 0x2bd   : > { %v843_v59 = vmul.f32 %v1980_v57, %v2158_v13  ;;  %v1064_v3 = vmul.f32 %v2096_v28, %v2158_v13  ;;  %v1171_v12 = vmul.f32 %v2104_v35, %v2158_v13 }
 0x2be   : > { %v725_v63 = vpop.xlane.xlu1 %724  ;;  %v852_v33 = vsel %vm662_vm0, %v842_v14, 0.0 }
 0x2bf   : > { %1483 = vrcp.f32 %v725_v63  ;;  %v855_v8 = vsel %vm662_vm0, %v843_v59, 0.0  ;;  %853 = vadd.xlane.f32.xlu0 %v852_v33  ;;  %v1076_v23 = vsel %vm662_vm0, %v1064_v3, 0.0 }
 0x2c0   : > { %856 = vadd.xlane.f32.xlu1 %v855_v8 }
 0x2c2   : > { %v731_v7 = vpop.xlane.xlu1 %730 }
 0x2c3   : > { %1485 = vrcp.f32 %v731_v7  ;;  %v728_v10 = vpop.xlane.xlu0 %727 }
 0x2c4   : > { %1487 = vrcp.f32 %v728_v10 }
 0x2c5   : > { %v1482_v54 = vpop.eup %1481 }
 0x2c6   : > { %v2166_v17 = vmul.f32 %v1482_v54, %v1466_v16 }
 0x2c8   : > { %v844_v50 = vmul.f32 %v1991_v32, %v2166_v17  ;;  %v1172_v40 = vmul.f32 %v2108_v37, %v2166_v17 }
 0x2c9   : > { %v1484_v19 = vpop.eup %1483 }
 0x2ca   : > { %v2170_v57 = vmul.f32 %v1484_v19, %v1468_v6  ;;  %v858_v22 = vsel %vm662_vm0, %v844_v50, 0.0  ;;  %v1186_v28 = vsel %vm662_vm0, %v1172_v40, 0.0 }
 0x2cb   : > { %859 = vadd.xlane.f32.xlu0 %v858_v22 }
 0x2cc   : > { %v845_v15 = vmul.f32 %v1974_v55, %v2170_v57 }
 0x2cd   : > { %v1486_v42 = vpop.eup %1485 }
 0x2ce   : > { %v1488_v43 = vpop.eup %1487  ;;  %v2175_v46 = vmul.f32 %v1486_v42, %v1470_v20  ;;  %v861_v49 = vsel %vm662_vm0, %v845_v15, 0.0  ;;  %v966_v20 = vsel %vm662_vm0, %v956_v26, 0.0  ;;  %v1169_v15 = vmul.f32 %v2106_v36, %v2151_v11 }
 0x2cf   : > { %v748_v16 = vmul.f32 %v1488_v43, %v1472_v21  ;;  %862 = vadd.xlane.f32.xlu1 %v861_v49  ;;  %v959_v21 = vmul.f32 %v2086_v24, %v2170_v57  ;;  %v1180_v24 = vsel %vm662_vm0, %v1170_v56, 0.0  ;;  %v1065_v42 = vmul.f32 %v2110_v39, %v2166_v17 }
 0x2d0   : > { %v847_v32 = vmul.f32 %v2024_v62, %v2175_v46  ;;  %v1066_v43 = vmul.f32 %v2114_v45, %v2170_v57  ;;  %v882_v26 = vand.u32 127, %v260_v0 }
 0x2d1   : > { %v846_v6 = vmul.f32 %v1999_v61, %v748_v16  ;;  %v975_v4 = vsel %vm662_vm0, %v959_v21, 0.0  ;;  %v1062_v61 = vmul.f32 %v2092_v27, %v2151_v11  ;;  %v1183_v27 = vsel %vm662_vm0, %v1171_v12, 0.0 }
 0x2d2   : > { %v867_v58 = vsel %vm662_vm0, %v847_v32, 0.0  ;;  %v1067_v41 = vmul.f32 %v2112_v47, %v748_v16  ;;  %v1174_v8 = vmul.f32 %v2149_v31, %v748_v16  ;;  %v955_v47 = vmul.f32 %v2028_v9, %v2151_v11 }
 0x2d3   : > { %868 = vadd.xlane.f32.xlu1 %v867_v58  ;;  %v864_v55 = vsel %vm662_vm0, %v846_v6, 0.0  ;;  %v1070_v62 = vsel %vm662_vm0, %v1062_v61, 0.0  ;;  %v958_v9 = vmul.f32 %v2094_v60, %v2166_v17  ;;  %v960_v19 = vmul.f32 %v2098_v30, %v748_v16  ;;  %v1160_v16 = vpop.permute.xlu1 %1159 }
 0x2d4   : > { %865 = vadd.xlane.f32.xlu0 %v864_v55  ;;  %v1085_v38 = vsel %vm662_vm0, %v1067_v41, 0.0  ;;  %v1177_v60 = vsel %vm662_vm0, %v1169_v15, 0.0  ;;  %v1079_v30 = vsel %vm662_vm0, %v1065_v42, 0.0  ;;  %v1173_v11 = vmul.f32 %v2143_v51, %v2170_v57 }
 0x2d5   : > { %v972_v50 = vsel %vm662_vm0, %v958_v9, 0.0  ;;  %v978_v22 = vsel %vm662_vm0, %v960_v19, 0.0  ;;  %v1068_v17 = vmul.f32 %v2145_v52, %v2175_v46  ;;  %v885_v55 = vsub.s32 %v882_v26, %v1867_v1 }
 0x2d6   : > { %v1189_v39 = vsel %vm662_vm0, %v1173_v11, 0.0  ;;  %v1209_v15 = vadd.s32 4294967272, %v882_v26 }
 0x2d7   : > { %967 = vadd.xlane.f32.xlu1 %v966_v20  ;;  %v1088_v45 = vsel %vm662_vm0, %v1068_v17, 0.0 }
 0x2db   : > { %976 = vadd.xlane.f32.xlu1 %v975_v4 }
 0x2df   : > { %1071 = vadd.xlane.f32.xlu1 %v1070_v62 }
 0x2e3   : > { %1077 = vadd.xlane.f32.xlu1 %v1076_v23 }
 0x2e7   : > { %1181 = vadd.xlane.f32.xlu1 %v1180_v24 }
 0x2eb   : > { %1184 = vadd.xlane.f32.xlu1 %v1183_v27 }
 0x2ef   : > { %1187 = vadd.xlane.f32.xlu1 %v1186_v28 }
 0x2f3   : > { %1086 = vadd.xlane.f32.xlu1 %v1085_v38 }
 0x2f7   : > { %v734_v29 = vpop.xlane.xlu0 %733 }
 0x2f8   : > { %1489 = vrcp.f32 %v734_v29 }
 0x2fb   : > { %v1158_v7 = vpop.permute.xlu0 %1157 }
 0x2fc   : > { %v1175_v10 = vmul.f32 %v1158_v7, %v2175_v46 }
 0x2fe   : > { %v1195_v31 = vsel %vm662_vm0, %v1175_v10, 0.0 }
 0x302   : > { %v1490_v14 = vpop.eup %1489 }
 0x303   : > { %v750_v35 = vmul.f32 %v1490_v14, %v2137_v48  ;;  %v1192_v48 = vsel %vm662_vm0, %v1174_v8, 0.0 }
 0x305   : > { %v962_v59 = vmul.f32 %v2134_v2, %v750_v35  ;;  %v848_v63 = vmul.f32 %v2071_v18, %v750_v35  ;;  %v963_v2 = vsel %vm662_vm0, %v955_v47, 0.0  ;;  %v957_v18 = vmul.f32 %v2088_v25, %v2158_v13 }
 0x306   : > { %v1063_v25 = vmul.f32 %v2102_v34, %v2156_v5  ;;  %v1082_v34 = vsel %vm662_vm0, %v1066_v43, 0.0  ;;  %v961_v5 = vmul.f32 %v2117_v44, %v2175_v46  ;;  %v1069_v49 = vmul.f32 %v2147_v53, %v750_v35 }
 0x307   : > { %v984_v37 = vsel %vm662_vm0, %v962_v59, 0.0  ;;  %v870_v33 = vsel %vm662_vm0, %v848_v63, 0.0  ;;  %v969_v54 = vsel %vm662_vm0, %v957_v18, 0.0  ;;  %v1176_v44 = vmul.f32 %v1160_v16, %v750_v35 }
 0x308   : > { %985 = vadd.xlane.f32.xlu1 %v984_v37  ;;  %871 = vadd.xlane.f32.xlu0 %v870_v33  ;;  %v1073_v13 = vsel %vm662_vm0, %v1063_v25, 0.0  ;;  %v981_v36 = vsel %vm662_vm0, %v961_v5, 0.0  ;;  %v1091_v32 = vsel %vm662_vm0, %v1069_v49, 0.0 }
 0x309   : > { %v1198_v6 = vsel %vm662_vm0, %v1176_v44, 0.0 }
 0x30c   : > { %1193 = vadd.xlane.f32.xlu1 %v1192_v48  ;;  %964 = vadd.xlane.f32.xlu0 %v963_v2  ;;  %v995_v2 = vadd.s32 4294967288, %v882_v26 }
 0x310   : > { %970 = vadd.xlane.f32.xlu0 %v969_v54  ;;  %1196 = vadd.xlane.f32.xlu1 %v1195_v31  ;;  %v998_v31 = vsub.s32 %v995_v2, %v1867_v1 }
 0x314   : > { %973 = vadd.xlane.f32.xlu0 %v972_v50 }
 0x318   : > { %979 = vadd.xlane.f32.xlu0 %v978_v22 }
 0x31c   : > { %1074 = vadd.xlane.f32.xlu0 %v1073_v13  ;;  %v1102_v13 = vadd.s32 4294967280, %v882_v26 }
 0x31e   : > { %v1105_v11 = vsub.s32 %v1102_v13, %v1867_v1 }
 0x320   : > { %1178 = vadd.xlane.f32.xlu0 %v1177_v60 }
 0x324   : > { %1080 = vadd.xlane.f32.xlu0 %v1079_v30 }
 0x328   : > { %1083 = vadd.xlane.f32.xlu0 %v1082_v34 }
 0x32c   : > { %982 = vadd.xlane.f32.xlu0 %v981_v36 }
 0x330   : > { %1190 = vadd.xlane.f32.xlu0 %v1189_v39  ;;  %v1212_v39 = vsub.s32 %v1209_v15, %v1867_v1 }
 0x334   : > { %1089 = vadd.xlane.f32.xlu0 %v1088_v45 }
 0x338   : > { %1092 = vadd.xlane.f32.xlu0 %v1091_v32 }
 0x33c   : > { %1199 = vadd.xlane.f32.xlu0 %v1198_v6 }
 0x344   : > { %v851_v51 = vpop.xlane.xlu1 %850 }
 0x345   : > { %v886_v4 = vrot.slane %v851_v51, %v885_v55 }
 0x34c   : > { %v854_v46 = vpop.xlane.xlu0 %853 }
 0x34d   : > { %v857_v57 = vpop.xlane.xlu1 %856  ;;  %v890_v53 = vrot.slane %v854_v46, %v885_v55 }
 0x34e   : > { %v894_v61 = vrot.slane %v857_v57, %v885_v55 }
 0x34f   : > { %v916_v3 = vsel %vm915_vm1, %v890_v53, %v886_v4 }
 0x350   : > { %v918_v12 = vsel %vm917_vm2, %v894_v61, %v916_v3 }
 0x358   : > { %v860_v20 = vpop.xlane.xlu0 %859 }
 0x359   : > { %v898_v23 = vrot.slane %v860_v20, %v885_v55 }
 0x35b   : > { %v920_v27 = vsel %vm919_vm3, %v898_v23, %v918_v12 }
 0x35c   : > { %v863_v58 = vpop.xlane.xlu1 %862 }
 0x35d   : > { %v902_v56 = vrot.slane %v863_v58, %v885_v55 }
 0x35f   : > { %v922_v40 = vsel %vm921_vm4, %v902_v56, %v920_v27 }
 0x360   : > { %v869_v52 = vpop.xlane.xlu1 %868 }
 0x361   : > { %v866_v62 = vpop.xlane.xlu0 %865  ;;  %v910_v28 = vrot.slane %v869_v52, %v885_v55 }
 0x362   : > { %v906_v0 = vrot.slane %v866_v62, %v885_v55 }
 0x364   : > { %v968_v21 = vpop.xlane.xlu1 %967  ;;  %v924_v41 = vsel %vm923_vm5, %v906_v0, %v922_v40 }
 0x365   : > { %v926_v35 = vsel %vm925_vm6, %v910_v28, %v924_v41  ;;  %v1003_v22 = vrot.slane %v968_v21, %v998_v31 }
 0x368   : > { %v977_v24 = vpop.xlane.xlu1 %976 }
 0x369   : > { %v1015_v36 = vrot.slane %v977_v24, %v998_v31 }
 0x36c   : > { %v1072_v29 = vpop.xlane.xlu1 %1071 }
 0x36d   : > { %v1106_v57 = vrot.slane %v1072_v29, %v1105_v11 }
 0x370   : > { %v1078_v37 = vpop.xlane.xlu1 %1077 }
 0x371   : > { %v1114_v53 = vrot.slane %v1078_v37, %v1105_v11 }
 0x374   : > { %v1182_v47 = vpop.xlane.xlu1 %1181 }
 0x375   : > { %v1217_v58 = vrot.slane %v1182_v47, %v1212_v39 }
 0x378   : > { %v1185_v10 = vpop.xlane.xlu1 %1184 }
 0x379   : > { %v1221_v21 = vrot.slane %v1185_v10, %v1212_v39 }
 0x37c   : > { %v1188_v54 = vpop.xlane.xlu1 %1187 }
 0x37d   : > { %v1225_v0 = vrot.slane %v1188_v54, %v1212_v39 }
 0x380   : > { %v1087_v60 = vpop.xlane.xlu1 %1086 }
 0x381   : > { %v1126_v40 = vrot.slane %v1087_v60, %v1105_v11 }
 0x395   : > { %v872_v38 = vpop.xlane.xlu0 %871  ;;  %v986_v17 = vpop.xlane.xlu1 %985 }
 0x396   : > { %v914_v14 = vrot.slane %v872_v38, %v885_v55  ;;  %v1027_v6 = vrot.slane %v986_v17, %v998_v31 }
 0x398   : > { %v928_v59 = vsel %vm927_vm7, %v914_v14, %v926_v35 }
 0x399   : > { %930 = vst.msk [vmem:[%s2260_s30] sm:$0xff] %vm662_vm0, %v928_v59  ;;  %v965_v63 = vpop.xlane.xlu0 %964  ;;  %v1194_v61 = vpop.xlane.xlu1 %1193 }
 0x39a   : > { %v999_v9 = vrot.slane %v965_v63, %v998_v31  ;;  %v1233_v29 = vrot.slane %v1194_v61, %v1212_v39 }
 0x39c   : > { %v1028_v42 = vsel %vm915_vm1, %v1003_v22, %v999_v9 }
 0x39d   : > { %v971_v33 = vpop.xlane.xlu0 %970  ;;  %v1197_v14 = vpop.xlane.xlu1 %1196 }
 0x39e   : > { %v1007_v19 = vrot.slane %v971_v33, %v998_v31 }
 0x3a0   : > { %v1029_v43 = vsel %vm917_vm2, %v1007_v19, %v1028_v42 }
 0x3a1   : > { %v974_v8 = vpop.xlane.xlu0 %973 }
 0x3a2   : > { %v1011_v25 = vrot.slane %v974_v8, %v998_v31  ;;  %v1237_v8 = vrot.slane %v1197_v14, %v1212_v39 }
 0x3a4   : > { %v1030_v34 = vsel %vm919_vm3, %v1011_v25, %v1029_v43 }
 0x3a5   : > { %v980_v7 = vpop.xlane.xlu0 %979  ;;  %v1031_v49 = vsel %vm921_vm4, %v1015_v36, %v1030_v34 }
 0x3a6   : > { %v1019_v5 = vrot.slane %v980_v7, %v998_v31 }
 0x3a8   : > { %v1032_v51 = vsel %vm923_vm5, %v1019_v5, %v1031_v49 }
 0x3a9   : > { %v1075_v48 = vpop.xlane.xlu0 %1074 }
 0x3aa   : > { %v1110_v16 = vrot.slane %v1075_v48, %v1105_v11 }
 0x3ac   : > { %v1135_v1 = vsel %vm915_vm1, %v1110_v16, %v1106_v57 }
 0x3ad   : > { %v1179_v18 = vpop.xlane.xlu0 %1178  ;;  %v1136_v3 = vsel %vm917_vm2, %v1114_v53, %v1135_v1 }
 0x3ae   : > { %v1213_v44 = vrot.slane %v1179_v18, %v1212_v39 }
 0x3b0   : > { %v1242_v55 = vsel %vm915_vm1, %v1217_v58, %v1213_v44 }
 0x3b1   : > { %v1081_v50 = vpop.xlane.xlu0 %1080  ;;  %v1243_v62 = vsel %vm917_vm2, %v1221_v21, %v1242_v55 }
 0x3b2   : > { %v1118_v20 = vrot.slane %v1081_v50, %v1105_v11  ;;  %v1244_v28 = vsel %vm919_vm3, %v1225_v0, %v1243_v62 }
 0x3b4   : > { %v1137_v24 = vsel %vm919_vm3, %v1118_v20, %v1136_v3 }
 0x3b5   : > { %v1084_v30 = vpop.xlane.xlu0 %1083 }
 0x3b6   : > { %v1122_v4 = vrot.slane %v1084_v30, %v1105_v11 }
 0x3b8   : > { %v1138_v12 = vsel %vm921_vm4, %v1122_v4, %v1137_v24 }
 0x3b9   : > { %v983_v45 = vpop.xlane.xlu0 %982  ;;  %v1139_v35 = vsel %vm923_vm5, %v1126_v40, %v1138_v12 }
 0x3ba   : > { %v1023_v32 = vrot.slane %v983_v45, %v998_v31 }
 0x3bc   : > { %v1033_v26 = vsel %vm925_vm6, %v1023_v32, %v1032_v51 }
 0x3bd   : > { %v1034_v52 = vsel %vm927_vm7, %v1027_v6, %v1033_v26  ;;  %v1191_v46 = vpop.xlane.xlu0 %1190 }
 0x3be   : > { %1037 = vst.msk [vmem:[%s2260_s30] sm:$0xff] %vm1036_vm8, %v1034_v52  ;;  %v1229_v23 = vrot.slane %v1191_v46, %v1212_v39 }
 0x3c0   : > { %v1245_v41 = vsel %vm921_vm4, %v1229_v23, %v1244_v28 }
 0x3c1   : > { %v1090_v56 = vpop.xlane.xlu0 %1089  ;;  %v1246_v37 = vsel %vm923_vm5, %v1233_v29, %v1245_v41 }
 0x3c2   : > { %v1130_v27 = vrot.slane %v1090_v56, %v1105_v11  ;;  %v1247_v10 = vsel %vm925_vm6, %v1237_v8, %v1246_v37 }
 0x3c4   : > { %v1140_v63 = vsel %vm925_vm6, %v1130_v27, %v1139_v35 }
 0x3c5   : > { %v1093_v38 = vpop.xlane.xlu0 %1092 }
 0x3c6   : > { %v1134_v59 = vrot.slane %v1093_v38, %v1105_v11 }
 0x3c8   : > { %v1141_v33 = vsel %vm927_vm7, %v1134_v59, %v1140_v63 }
 0x3c9   : > { %1144 = vst.msk [vmem:[%s2260_s30] sm:$0xff] %vm1143_vm9, %v1141_v33  ;;  %v1200_v47 = vpop.xlane.xlu0 %1199 }
 0x3ca   : > { %v1241_v7 = vrot.slane %v1200_v47, %v1212_v39 }
 0x3cc   : > { %v1248_v48 = vsel %vm927_vm7, %v1241_v7, %v1247_v10 }
 0x3cd   : > { %1251 = vst.msk [vmem:[%s2260_s30] sm:$0xff] %vm1250_vm10, %v1248_v48 }
 0x3ce   : > { %1594 = shalt.err (!%p1591_p8)
}
 0x3cf   : > { %s1595_s10 = scalar_lea.hbm %s2294_s27, 128  ;;  %s1599_s8 = scalar_lea.hbm %s2343_s3, 256 }
 0x3d0   : > { %p1596_p13 = scmp.ne.s32.totalorder %s2294_s27, %s1595_s10  ;;  %p1600_p3 = scmp.lt.u32.totalorder %s2294_s27, %s2343_s3 }
 0x3d1   : > { %p1601_p4 = scmp.lt.u32.totalorder %s1599_s8, %s1595_s10  ;;  %p1603_p10 = scmp.lt.u32.totalorder %s1595_s10, %s2294_s27 }
 0x3d2   : > { %p1597_p11 = pnand %p1596_p13, %p2361_p5 }
 0x3d3   : > { %p1602_p2 = por %p1601_p4, %p1600_p3 }
 0x3d4   : > { %p1598_p1 = pneg %p1597_p11 }
 0x3d5   : > { %p1604_p7 = por %p1603_p10, %p1602_p2 }
 0x3d7   : > { %p1605_p9 = pnand %p1604_p7, %p1598_p1 }
 0x3d9   : > { %1608 = shalt.err (!%p1605_p9)
}
 0x3da   : > { %1403 = dma.vmem_to_hbm [thread:$0]  (%p2361_p5), %s2296_s29, 128, %s2294_s27, %s1253_s16  }
 0x3db PF: > { %s1278_s11 = sand.u32 1, %s1639_s12   ;;  %p2362_p6 = scmp.ne.s32.totalorder %s2351_s24, 0 }
 0x3dc   : > { %p2363_p12 = scmp.ge.s32.totalorder %s1651_s15, 2  ;;  %s1279_s9 = scalar_lea.sflag [#allocation4], %s1278_s11 }
 0x3de   : > { %p1416_p0 = pnand %p2363_p12, %p2362_p6 }
 0x3e0   : > { %1634 = dma.done.wait (!%p1416_p0), %s1279_s9, 128  }
 0x3e1   : > { %1636 = vsyncadd (!%p1416_p0), %s1279_s9, 4294967168  ;;  %p19_p8 = scmp.ge.s32.totalorder %s1706_s18, 4   ;;  %s2364_s12 = smov %s1643_s13 }
 0x3e2   : > { %s2365_s13 = smov %s1647_s14  ;;  %s2366_s14 = smov %s1718_s21 }
 0x3e3   : > { %s2367_s15 = smov %s1706_s18  ;;  %21 = sbr.rel (!%p19_p8) target bundleno = 9 (0x9), region = 101 }
 0x3ea   :  { %1284 = vsyncpa [#allocation3], 1 }
 0x3eb   :  { %1286 = vsyncpa [#allocation3 + $0x1], 1 }
 0x3ec   :  { %1287 = vsyncpa [#allocation6], 1 }
 0x3ed   :  { %1289 = vsyncpa [#allocation6 + $0x1], 1 }
 0x3ee   :  { %1290 = vsyncpa [#allocation4], 1 }
 0x3ef   :  { %1292 = vsyncpa [#allocation4 + $0x1], 1 }

</bundles_post_ra>
